<compile_context>
chip_gen: v5e
topology: v5e:2x2
jax: 0.10.0
libtpu: 0.0.40
codegen_flags: <defaults>
</compile_context>

<pallas_src>
import functools

import jax
import jax.numpy as jnp
from jax.experimental import pallas as pl
from jax.experimental.pallas import tpu as pltpu

MAX_VAL = 10000.0


def _round_up(x, m):
    return (x + m - 1) // m * m


def _ranker_kernel(predicts_ref, seqs_ref, scores_ref, rank_ref, vlen_ref):
    k = pl.program_id(1)  # N-tile index (reduction axis, last in grid)

    @pl.when(k == 0)
    def _():
        rank_ref[...] = jnp.zeros_like(rank_ref)
        vlen_ref[...] = jnp.zeros_like(vlen_ref)

    scores = scores_ref[...].astype(jnp.float32)   # (TB, TN)
    seqs = seqs_ref[...]                           # (TB, L) i32 (global item ids)
    predicts = predicts_ref[...]                   # (TB, 1) f32 (gathered pre-mask)

    tb, tn = scores.shape
    # Global column (item) index of each lane in this N tile.
    col = jax.lax.broadcasted_iota(jnp.int32, (tb, tn), 1) + k * tn

    # scores[arange(B)[:,None], seqs] = -MAX_VAL   (history masking, in place)
    masked = scores
    for j in range(seqs.shape[1]):                 # L is small & static -> unrolled
        masked = jnp.where(col == seqs[:, j:j + 1], jnp.float32(-MAX_VAL), masked)

    # valid_length += (scores > -MAX_VAL).sum(-1) ; rank += (predicts < scores).sum(-1)
    vlen_ref[...] += jnp.sum((masked > -MAX_VAL).astype(jnp.float32),
                             axis=-1, keepdims=True)
    rank_ref[...] += jnp.sum((predicts < masked).astype(jnp.float32),
                             axis=-1, keepdims=True)


def ranker_rank_kernel(scores, labels, seqs, *, block_b=512, block_n=2048):
    """Returns (rank, valid_length), each of shape (B,), float32."""
    b, n = scores.shape
    labels2d = labels.reshape(b, 1).astype(jnp.int32)
    seqs = seqs.astype(jnp.int32)
    l = seqs.shape[1]

    # predicts gathered BEFORE masking, outside the kernel (negligible O(B)).
    # Note: out-of-range labels clamp instead of erroring (PyTorch would raise).
    predicts = jnp.take_along_axis(scores, labels2d, axis=-1).astype(jnp.float32)

    # Tile sizes: batch on sublanes (multiple of 8), items on lanes (mult. of 128).
    tb = min(_round_up(b, 8), block_b)
    b_pad = _round_up(b, tb)
    tn = min(_round_up(n, 128), block_n)
    n_pad = _round_up(n, tn)

    if b_pad != b:
        scores = jnp.pad(scores, ((0, b_pad - b), (0, 0)))
        predicts = jnp.pad(predicts, ((0, b_pad - b), (0, 0)))
        seqs = jnp.pad(seqs, ((0, b_pad - b), (0, 0)), constant_values=-1)
    if n_pad != n:
        # -inf padding: never counts toward valid_length and never beats predicts.
        scores = jnp.pad(scores, ((0, 0), (0, n_pad - n)), constant_values=-jnp.inf)

    grid = (b_pad // tb, n_pad // tn)

    rank, vlen = pl.pallas_call(
        _ranker_kernel,
        out_shape=(
            jax.ShapeDtypeStruct((b_pad, 1), jnp.float32),
            jax.ShapeDtypeStruct((b_pad, 1), jnp.float32),
        ),
        grid_spec=pltpu.PrefetchScalarGridSpec(
            num_scalar_prefetch=0,
            grid=grid,
            in_specs=[
                pl.BlockSpec((tb, 1), lambda i, k: (i, 0)),    # predicts
                pl.BlockSpec((tb, l), lambda i, k: (i, 0)),    # seqs
                pl.BlockSpec((tb, tn), lambda i, k: (i, k)),   # scores (native dtype)
            ],
            out_specs=[
                pl.BlockSpec((tb, 1), lambda i, k: (i, 0)),    # rank (resident acc)
                pl.BlockSpec((tb, 1), lambda i, k: (i, 0)),    # valid_length
            ],
        ),
        compiler_params=pltpu.CompilerParams(
            dimension_semantics=("parallel", "arbitrary"),
            vmem_limit_bytes=48 * 1024 * 1024,
        ),
    )(predicts, seqs, scores)

    return rank[:b, 0], vlen[:b, 0]


@functools.partial(jax.jit, static_argnames=("ks",))
def _ranker_metrics(rank, vlen, ks):
    res = []
    for k in ks:
        indicator = (rank < k).astype(jnp.float32)
        res.append((1.0 / jnp.log2(rank + 2.0) * indicator).mean())   # NDCG@k
        res.append(indicator.mean())                                  # HR@k
    res.append((1.0 / (rank + 1.0)).mean())                           # MRR
    res.append((1.0 - rank / vlen).mean())                            # mean rank ratio
    return jnp.stack(res)                                             # single transfer


def ranker_forward(scores, labels, seqs=None, ks=(1, 5, 10)):
    """JAX/Pallas re-implementation of Ranker.forward."""
    b, n = scores.shape
    if seqs is None:
        seqs = jnp.full((b, 1), -1, dtype=jnp.int32)   # never matches any column
    # TODO(synk): the `users`/`user2seq` branch (Python dict of ragged per-user
    # histories) has no clean Pallas equivalent and is not implemented.
    rank, vlen = ranker_rank_kernel(scores, labels, seqs)
    metrics = jax.device_get(_ranker_metrics(rank, vlen, tuple(ks)))
    return [float(x) for x in metrics] + [0]


def _reference(scores, labels2d, seqs):
    n = scores.shape[1]
    col = jnp.arange(n)[None, :]
    predicts = jnp.take_along_axis(scores, labels2d, axis=-1)        # before masking
    mask = (col[:, None, :] == seqs[:, :, None]).any(axis=1)
    masked = jnp.where(mask, -MAX_VAL, scores)
    ref_vlen = (masked > -MAX_VAL).sum(-1).astype(jnp.float32)
    ref_rank = (predicts < masked).sum(-1).astype(jnp.float32)
    return ref_rank, ref_vlen


if __name__ == "__main__":
    key = jax.random.PRNGKey(0)
    B, N, L = 16, 256, 8
    ks = (1, 5, 10)

    k1, k2, k3 = jax.random.split(key, 3)
    scores = jax.random.normal(k1, (B, N), dtype=jnp.float32)
    labels = jax.random.randint(k2, (B, 1), 0, N, dtype=jnp.int32)   # (B, 1) like PyTorch
    seqs = jax.random.randint(k3, (B, L), 0, N, dtype=jnp.int32)

    ref_rank, ref_vlen = _reference(scores, labels, seqs)

    # 1) Default (single-block) path.
    rank, vlen = ranker_rank_kernel(scores, labels.squeeze(-1), seqs)
    jax.block_until_ready((rank, vlen))
    assert jnp.allclose(rank, ref_rank), (rank, ref_rank)
    assert jnp.allclose(vlen, ref_vlen), (vlen, ref_vlen)

    # 2) Force multi-step grid on both axes (exercise the N-axis accumulation).
    rank2, vlen2 = ranker_rank_kernel(scores, labels.squeeze(-1), seqs,
                                      block_b=8, block_n=128)
    jax.block_until_ready((rank2, vlen2))
    assert jnp.allclose(rank2, ref_rank)
    assert jnp.allclose(vlen2, ref_vlen)

    # 3) Non-multiple batch size (exercise padding path).
    Bs = 13
    rank3, vlen3 = ranker_rank_kernel(scores[:Bs], labels[:Bs].squeeze(-1),
                                      seqs[:Bs], block_b=8, block_n=128)
    jax.block_until_ready((rank3, vlen3))
    assert jnp.allclose(rank3, ref_rank[:Bs])
    assert jnp.allclose(vlen3, ref_vlen[:Bs])

    # Full forward (metrics).
    metrics = ranker_forward(scores, labels.squeeze(-1), seqs, ks=ks)
    assert len(metrics) == 2 * len(ks) + 3

    print("KERNEL_OK")
</pallas_src>

<mosaic_0001>
module attributes {stable_mosaic.version = 11 : i64} {
  func.func @_ranker_kernel(%arg0: i32, %arg1: i32, %arg2: memref<16x1xf32, #tpu.memory_space<vmem>>, %arg3: memref<16x8xi32, #tpu.memory_space<vmem>>, %arg4: memref<16x256xf32, #tpu.memory_space<vmem>>, %arg5: memref<16x1xf32, #tpu.memory_space<vmem>>, %arg6: memref<16x1xf32, #tpu.memory_space<vmem>>) attributes {dimension_semantics = [#tpu.dimension_semantics<parallel>, #tpu.dimension_semantics<arbitrary>], iteration_bounds = array<i64: 1, 1>, scalar_prefetch = 0 : i64, scratch_operands = 0 : i64, tpu.core_type = #tpu.core_type<tc>, window_params = [{transform_indices = @transform_0, window_bounds = array<i64: 16, 1>}, {transform_indices = @transform_1, window_bounds = array<i64: 16, 8>}, {transform_indices = @transform_2, window_bounds = array<i64: 16, 256>}, {transform_indices = @transform_3, window_bounds = array<i64: 16, 1>}, {transform_indices = @transform_4, window_bounds = array<i64: 16, 1>}]} {
    %c0_i32 = arith.constant 0 : i32
    %0 = arith.cmpi eq, %arg1, %c0_i32 : i32
    %1 = arith.extui %0 : i1 to i32
    %c0_i32_0 = arith.constant 0 : i32
    %2 = arith.cmpi ne, %1, %c0_i32_0 : i32
    scf.if %2 {
      %cst_24 = arith.constant 0.000000e+00 : f32
      %68 = vector.broadcast %cst_24 : f32 to vector<16x1xf32>
      %c0_25 = arith.constant 0 : index
      %c0_26 = arith.constant 0 : index
      %69 = vector.load %arg5[%c0_25, %c0_26] : memref<16x1xf32, #tpu.memory_space<vmem>>, vector<16x1xf32>
      tpu.vector_store %arg5[%c0_25, %c0_26], %68 {strides = array<i32>} : memref<16x1xf32, #tpu.memory_space<vmem>>, vector<16x1xf32>,
      %cst_27 = arith.constant 0.000000e+00 : f32
      %70 = vector.broadcast %cst_27 : f32 to vector<16x1xf32>
      %c0_28 = arith.constant 0 : index
      %c0_29 = arith.constant 0 : index
      %71 = vector.load %arg6[%c0_28, %c0_29] : memref<16x1xf32, #tpu.memory_space<vmem>>, vector<16x1xf32>
      tpu.vector_store %arg6[%c0_28, %c0_29], %70 {strides = array<i32>} : memref<16x1xf32, #tpu.memory_space<vmem>>, vector<16x1xf32>,
    } else {
    }
    %c0 = arith.constant 0 : index
    %c0_1 = arith.constant 0 : index
    %3 = vector.load %arg4[%c0, %c0_1] : memref<16x256xf32, #tpu.memory_space<vmem>>, vector<16x256xf32>
    %c0_2 = arith.constant 0 : index
    %c0_3 = arith.constant 0 : index
    %4 = vector.load %arg3[%c0_2, %c0_3] : memref<16x8xi32, #tpu.memory_space<vmem>>, vector<16x8xi32>
    %c0_4 = arith.constant 0 : index
    %c0_5 = arith.constant 0 : index
    %5 = vector.load %arg2[%c0_4, %c0_5] : memref<16x1xf32, #tpu.memory_space<vmem>>, vector<16x1xf32>
    %6 = tpu.iota {dimensions = array<i32: 1>} : vector<16x256xi32>
    %c256_i32 = arith.constant 256 : i32
    %7 = arith.muli %arg1, %c256_i32 : i32
    %8 = vector.broadcast %7 : i32 to vector<16x256xi32>
    %9 = arith.addi %6, %8 : vector<16x256xi32>
    %10 = vector.extract_strided_slice %4 {offsets = [0, 0], sizes = [16, 1], strides = [1, 1]} : vector<16x8xi32> to vector<16x1xi32>
    %11 = vector.broadcast %10 : vector<16x1xi32> to vector<16x256xi32>
    %12 = arith.cmpi eq, %9, %11 : vector<16x256xi32>
    %cst = arith.constant -1.000000e+04 : f32
    %13 = vector.broadcast %cst : f32 to vector<16x256xf32>
    %14 = arith.select %12, %13, %3 : vector<16x256xi1>, vector<16x256xf32>
    %15 = vector.extract_strided_slice %4 {offsets = [0, 1], sizes = [16, 1], strides = [1, 1]} : vector<16x8xi32> to vector<16x1xi32>
    %16 = vector.broadcast %15 : vector<16x1xi32> to vector<16x256xi32>
    %17 = arith.cmpi eq, %9, %16 : vector<16x256xi32>
    %cst_6 = arith.constant -1.000000e+04 : f32
    %18 = vector.broadcast %cst_6 : f32 to vector<16x256xf32>
    %19 = arith.select %17, %18, %14 : vector<16x256xi1>, vector<16x256xf32>
    %20 = vector.extract_strided_slice %4 {offsets = [0, 2], sizes = [16, 1], strides = [1, 1]} : vector<16x8xi32> to vector<16x1xi32>
    %21 = vector.broadcast %20 : vector<16x1xi32> to vector<16x256xi32>
    %22 = arith.cmpi eq, %9, %21 : vector<16x256xi32>
    %cst_7 = arith.constant -1.000000e+04 : f32
    %23 = vector.broadcast %cst_7 : f32 to vector<16x256xf32>
    %24 = arith.select %22, %23, %19 : vector<16x256xi1>, vector<16x256xf32>
    %25 = vector.extract_strided_slice %4 {offsets = [0, 3], sizes = [16, 1], strides = [1, 1]} : vector<16x8xi32> to vector<16x1xi32>
    %26 = vector.broadcast %25 : vector<16x1xi32> to vector<16x256xi32>
    %27 = arith.cmpi eq, %9, %26 : vector<16x256xi32>
    %cst_8 = arith.constant -1.000000e+04 : f32
    %28 = vector.broadcast %cst_8 : f32 to vector<16x256xf32>
    %29 = arith.select %27, %28, %24 : vector<16x256xi1>, vector<16x256xf32>
    %30 = vector.extract_strided_slice %4 {offsets = [0, 4], sizes = [16, 1], strides = [1, 1]} : vector<16x8xi32> to vector<16x1xi32>
    %31 = vector.broadcast %30 : vector<16x1xi32> to vector<16x256xi32>
    %32 = arith.cmpi eq, %9, %31 : vector<16x256xi32>
    %cst_9 = arith.constant -1.000000e+04 : f32
    %33 = vector.broadcast %cst_9 : f32 to vector<16x256xf32>
    %34 = arith.select %32, %33, %29 : vector<16x256xi1>, vector<16x256xf32>
    %35 = vector.extract_strided_slice %4 {offsets = [0, 5], sizes = [16, 1], strides = [1, 1]} : vector<16x8xi32> to vector<16x1xi32>
    %36 = vector.broadcast %35 : vector<16x1xi32> to vector<16x256xi32>
    %37 = arith.cmpi eq, %9, %36 : vector<16x256xi32>
    %cst_10 = arith.constant -1.000000e+04 : f32
    %38 = vector.broadcast %cst_10 : f32 to vector<16x256xf32>
    %39 = arith.select %37, %38, %34 : vector<16x256xi1>, vector<16x256xf32>
    %40 = vector.extract_strided_slice %4 {offsets = [0, 6], sizes = [16, 1], strides = [1, 1]} : vector<16x8xi32> to vector<16x1xi32>
    %41 = vector.broadcast %40 : vector<16x1xi32> to vector<16x256xi32>
    %42 = arith.cmpi eq, %9, %41 : vector<16x256xi32>
    %cst_11 = arith.constant -1.000000e+04 : f32
    %43 = vector.broadcast %cst_11 : f32 to vector<16x256xf32>
    %44 = arith.select %42, %43, %39 : vector<16x256xi1>, vector<16x256xf32>
    %45 = vector.extract_strided_slice %4 {offsets = [0, 7], sizes = [16, 1], strides = [1, 1]} : vector<16x8xi32> to vector<16x1xi32>
    %46 = vector.broadcast %45 : vector<16x1xi32> to vector<16x256xi32>
    %47 = arith.cmpi eq, %9, %46 : vector<16x256xi32>
    %cst_12 = arith.constant -1.000000e+04 : f32
    %48 = vector.broadcast %cst_12 : f32 to vector<16x256xf32>
    %49 = arith.select %47, %48, %44 : vector<16x256xi1>, vector<16x256xf32>
    %c0_13 = arith.constant 0 : index
    %c0_14 = arith.constant 0 : index
    %50 = vector.load %arg6[%c0_13, %c0_14] : memref<16x1xf32, #tpu.memory_space<vmem>>, vector<16x1xf32>
    %cst_15 = arith.constant -1.000000e+04 : f32
    %51 = vector.broadcast %cst_15 : f32 to vector<16x256xf32>
    %52 = arith.cmpf ogt, %49, %51 : vector<16x256xf32>
    %53 = arith.extui %52 : vector<16x256xi1> to vector<16x256xi32>
    %54 = arith.sitofp %53 : vector<16x256xi32> to vector<16x256xf32>
    %cst_16 = arith.constant dense<0.000000e+00> : vector<16xf32>
    %55 = vector.multi_reduction <add>, %54, %cst_16 [1] : vector<16x256xf32> to vector<16xf32>
    %56 = vector.shape_cast %55 : vector<16xf32> to vector<16x1xf32>
    %57 = arith.addf %50, %56 : vector<16x1xf32>
    %c0_17 = arith.constant 0 : index
    %c0_18 = arith.constant 0 : index
    %58 = vector.load %arg6[%c0_17, %c0_18] : memref<16x1xf32, #tpu.memory_space<vmem>>, vector<16x1xf32>
    tpu.vector_store %arg6[%c0_17, %c0_18], %57 {strides = array<i32>} : memref<16x1xf32, #tpu.memory_space<vmem>>, vector<16x1xf32>,
    %c0_19 = arith.constant 0 : index
    %c0_20 = arith.constant 0 : index
    %59 = vector.load %arg5[%c0_19, %c0_20] : memref<16x1xf32, #tpu.memory_space<vmem>>, vector<16x1xf32>
    %60 = vector.broadcast %5 : vector<16x1xf32> to vector<16x256xf32>
    %61 = arith.cmpf olt, %60, %49 : vector<16x256xf32>
    %62 = arith.extui %61 : vector<16x256xi1> to vector<16x256xi32>
    %63 = arith.sitofp %62 : vector<16x256xi32> to vector<16x256xf32>
    %cst_21 = arith.constant dense<0.000000e+00> : vector<16xf32>
    %64 = vector.multi_reduction <add>, %63, %cst_21 [1] : vector<16x256xf32> to vector<16xf32>
    %65 = vector.shape_cast %64 : vector<16xf32> to vector<16x1xf32>
    %66 = arith.addf %59, %65 : vector<16x1xf32>
    %c0_22 = arith.constant 0 : index
    %c0_23 = arith.constant 0 : index
    %67 = vector.load %arg5[%c0_22, %c0_23] : memref<16x1xf32, #tpu.memory_space<vmem>>, vector<16x1xf32>
    tpu.vector_store %arg5[%c0_22, %c0_23], %66 {strides = array<i32>} : memref<16x1xf32, #tpu.memory_space<vmem>>, vector<16x1xf32>,
    return
  }
  func.func @transform_0(%arg0: i32, %arg1: i32) -> (i32, i32) {
    %c0_i32 = arith.constant 0 : i32
    %c0_i32_0 = arith.constant 0 : i32
    return %arg0, %c0_i32 : i32, i32
  }
  func.func @transform_1(%arg0: i32, %arg1: i32) -> (i32, i32) {
    %c0_i32 = arith.constant 0 : i32
    %c0_i32_0 = arith.constant 0 : i32
    return %arg0, %c0_i32 : i32, i32
  }
  func.func @transform_2(%arg0: i32, %arg1: i32) -> (i32, i32) {
    %c0_i32 = arith.constant 0 : i32
    return %arg0, %arg1 : i32, i32
  }
  func.func @transform_3(%arg0: i32, %arg1: i32) -> (i32, i32) {
    %c0_i32 = arith.constant 0 : i32
    %c0_i32_0 = arith.constant 0 : i32
    return %arg0, %c0_i32 : i32, i32
  }
  func.func @transform_4(%arg0: i32, %arg1: i32) -> (i32, i32) {
    %c0_i32 = arith.constant 0 : i32
    %c0_i32_0 = arith.constant 0 : i32
    return %arg0, %c0_i32 : i32, i32
  }
}

</mosaic_0001>

<bundles_post_ra>
// kernel: tpu_custom_call.1
= control target key start
LH: loop header
LB: loop body
LE: loop exit
PB: predicated region body
PF: predicated region fallthrough
CT: control target
= control target key end

     0   :  { %v251_v0 = vmov 1   ;;  %v252_v1 = vmov 0   ;;  %v253_v3 = vmov 2   ;;  %v254_v5 = vmov 3   ;;  %s438_s1 = inlined_call_operand.vmem [shape: s32[16,8], index: 1, kind: input, shape index: {}]   ;;  %s439_s0 = inlined_call_operand.vmem [shape: f32[16,1], index: 0, kind: input, shape index: {}]   ;;  %s440_s2 = inlined_call_operand.vmem [shape: f32[16,256], index: 2, kind: input, shape index: {}]   ;;  %s441_s4 = inlined_call_operand.vmem [shape: f32[16,1], index: 4, kind: output, shape index: {1}]   ;;  %s442_s3 = inlined_call_operand.vmem [shape: f32[16,1], index: 3, kind: output, shape index: {0}]  }
   0x1   :  { %237 = vset.pattern.permute.xlu1 %v251_v0  ;;  %236 = vset.pattern.permute.xlu0 %v252_v1  ;;  %v29_v2 = vld [vmem:[%s438_s1] sm:$0xff]  ;;  %v30_v4 = vld [vmem:[%s438_s1 + $0x8] sm:$0xff]  ;;  %v255_v6 = vmov 4   ;;  %v256_v7 = vmov 5   ;;  %v257_v9 = vmov 6   ;;  %v258_v10 = vmov 7  }
   0x2   :  { %55 = vperm.xlu1 %237, %v29_v2   ;;  %41 = vperm.xlu0 %236, %v29_v2   ;;  %v31_v8 = vld [vmem:[%s439_s0] sm:$0xff]  ;;  %v32_v11 = vld [vmem:[%s439_s0 + $0x8] sm:$0xff]  ;;  %v33_v18 = vlaneseq  ;;  %v27_v24 = vld [vmem:[%s440_s2 + $0x10] sm:$0xff]  ;;  %v259_v45 = vmov 0.0  }
   0x3   :  { %238 = vset.pattern.permute.xlu2 %v253_v3  ;;  %v28_v25 = vld [vmem:[%s440_s2 + $0x18] sm:$0xff]  ;;  %v25_v39 = vld [vmem:[%s440_s2] sm:$0xff]  ;;  %v26_v40 = vld [vmem:[%s440_s2 + $0x8] sm:$0xff] }
   0x4   :  { %69 = vperm.xlu2 %238, %v29_v2   ;;  %v305_v21 = vand.u32 127, %v33_v18 }
   0x6   :  { %v308_v23 = vadd.s32 128, %v305_v21 }
   0xa   :  { %58 = vperm.xlu1 %237, %v30_v4   ;;  %44 = vperm.xlu0 %236, %v30_v4  }
   0xc   :  { %72 = vperm.xlu2 %238, %v30_v4  }
  0x12   :  { %240 = vset.pattern.permute.xlu1 %v254_v5  ;;  %239 = vset.pattern.permute.xlu0 %v254_v5 }
  0x13   :  { %86 = vperm.xlu1 %240, %v30_v4   ;;  %83 = vperm.xlu0 %239, %v29_v2  }
  0x14   :  { %241 = vset.pattern.permute.xlu2 %v255_v6 }
  0x15   :  { %97 = vperm.xlu2 %241, %v29_v2  }
  0x1b   :  { %242 = vset.pattern.permute.xlu1 %v255_v6  ;;  %244 = vset.pattern.permute.xlu0 %v256_v7 }
  0x1c   :  { %100 = vperm.xlu1 %242, %v30_v4   ;;  %114 = vperm.xlu0 %244, %v30_v4  }
  0x1d   :  { %243 = vset.pattern.permute.xlu2 %v256_v7 }
  0x1e   :  { %111 = vperm.xlu2 %243, %v29_v2  }
  0x24   :  { %245 = vset.pattern.permute.xlu1 %v257_v9  ;;  %249 = vset.pattern.permute.xlu0 %v252_v1 }
  0x25   :  { %125 = vperm.xlu1 %245, %v29_v2   ;;  %181 = vperm.xlu0 %249, %v31_v8  }
  0x26   :  { %246 = vset.pattern.permute.xlu2 %v257_v9 }
  0x27   :  { %128 = vperm.xlu2 %246, %v30_v4  }
  0x2d   :  { %247 = vset.pattern.permute.xlu1 %v258_v10 }
  0x2e   :  { %139 = vperm.xlu1 %247, %v29_v2  }
  0x2f   :  { %248 = vset.pattern.permute.xlu2 %v258_v10 }
  0x30   :  { %142 = vperm.xlu2 %248, %v30_v4  }
  0x36   :  { %250 = vset.pattern.permute.xlu1 %v252_v1 }
  0x37   :  { %186 = vperm.xlu1 %250, %v32_v11  }
  0x5e   :  { %v297_v12 = vpop.permute.xlu2 %69 }
  0x66   :  { %v73_v13 = vpop.permute.xlu2 %72 }
  0x67   :  { %vm76_vm6 = vcmp.eq.s32.totalorder %v305_v21, %v73_v13  ;;  %vm77_vm7 = vcmp.eq.s32.totalorder %v308_v23, %v73_v13 }
  0x6f   :  { %v299_v14 = vpop.permute.xlu2 %97 }
  0x74   :  { %v301_v15 = vpop.permute.xlu1 %55  ;;  %v42_v16 = vpop.permute.xlu0 %41 }
  0x75   :  { %vm46_vm8 = vcmp.eq.s32.totalorder %v305_v21, %v42_v16  ;;  %vm47_vm9 = vcmp.eq.s32.totalorder %v308_v23, %v42_v16 }
  0x76   :  { %v50_v48 = vsel %vm46_vm8, -10000.0, %v25_v39  ;;  %v51_v49 = vsel %vm47_vm9, -10000.0, %v26_v40  ;;  %vm75_vm8 = vcmp.eq.s32.totalorder %v308_v23, %v297_v12 }
  0x78   :  { %v303_v17 = vpop.permute.xlu2 %111 }
  0x7c   :  { %v59_v19 = vpop.permute.xlu1 %58  ;;  %v45_v20 = vpop.permute.xlu0 %44 }
  0x7d   :  { %vm48_vm0 = vcmp.eq.s32.totalorder %v305_v21, %v45_v20  ;;  %vm49_vm1 = vcmp.eq.s32.totalorder %v308_v23, %v45_v20  ;;  %vm62_vm2 = vcmp.eq.s32.totalorder %v305_v21, %v59_v19  ;;  %vm63_vm3 = vcmp.eq.s32.totalorder %v308_v23, %v59_v19 }
  0x7e   :  { %v52_v28 = vsel %vm48_vm0, -10000.0, %v27_v24  ;;  %v53_v29 = vsel %vm49_vm1, -10000.0, %v28_v25 }
  0x7f   :  { %v66_v30 = vsel %vm62_vm2, -10000.0, %v52_v28  ;;  %v67_v31 = vsel %vm63_vm3, -10000.0, %v53_v29  ;;  %vm20_vm2 = vcmask 7168   ;;  %vm60_vm3 = vcmp.eq.s32.totalorder %v305_v21, %v301_v15 }
  0x80   :  { %v80_v33 = vsel %vm76_vm6, -10000.0, %v66_v30  ;;  %v81_v34 = vsel %vm77_vm7, -10000.0, %v67_v31  ;;  %24 = vst.msk [vmem:[%s441_s4 + $0x8] sm:$0xff] %vm20_vm2, %v259_v45  ;;  %vm74_vm7 = vcmp.eq.s32.totalorder %v305_v21, %v297_v12  ;;  %v64_v54 = vsel %vm60_vm3, -10000.0, %v50_v48 }
  0x81   :  { %v129_v22 = vpop.permute.xlu2 %128  ;;  %23 = vst.msk [vmem:[%s441_s4] sm:$0xff] %vm20_vm2, %v259_v45  ;;  %v78_v58 = vsel %vm74_vm7, -10000.0, %v64_v54 }
  0x82   :  { %vm132_vm10 = vcmp.eq.s32.totalorder %v305_v21, %v129_v22  ;;  %vm133_vm11 = vcmp.eq.s32.totalorder %v308_v23, %v129_v22  ;;  %21 = vst.msk [vmem:[%s442_s3] sm:$0xff] %vm20_vm2, %v259_v45 }
  0x83   :  { %22 = vst.msk [vmem:[%s442_s3 + $0x8] sm:$0xff] %vm20_vm2, %v259_v45 }
  0x85   :  { %v87_v26 = vpop.permute.xlu1 %86  ;;  %v318_v27 = vpop.permute.xlu0 %83 }
  0x86   :  { %vm90_vm4 = vcmp.eq.s32.totalorder %v305_v21, %v87_v26  ;;  %vm91_vm5 = vcmp.eq.s32.totalorder %v308_v23, %v87_v26  ;;  %vm88_vm9 = vcmp.eq.s32.totalorder %v305_v21, %v318_v27 }
  0x87   :  { %v94_v35 = vsel %vm90_vm4, -10000.0, %v80_v33  ;;  %v95_v36 = vsel %vm91_vm5, -10000.0, %v81_v34  ;;  %vm61_vm4 = vcmp.eq.s32.totalorder %v308_v23, %v301_v15  ;;  %v92_v60 = vsel %vm88_vm9, -10000.0, %v78_v58  ;;  %v153_v18 = vld [vmem:[%s441_s4 + $0x8] sm:$0xff] }
  0x88   :  { %v65_v55 = vsel %vm61_vm4, -10000.0, %v51_v49 }
  0x89   :  { %v79_v59 = vsel %vm75_vm8, -10000.0, %v65_v55  ;;  %v177_v22 = vld [vmem:[%s442_s3] sm:$0xff] }
  0x8a   :  { %v143_v32 = vpop.permute.xlu2 %142 }
  0x8b   :  { %vm146_vm12 = vcmp.eq.s32.totalorder %v305_v21, %v143_v32  ;;  %vm147_vm1 = vcmp.eq.s32.totalorder %v308_v23, %v143_v32 }
  0x8e   :  { %v101_v37 = vpop.permute.xlu1 %100  ;;  %v115_v38 = vpop.permute.xlu0 %114 }
  0x8f   :  { %vm104_vm13 = vcmp.eq.s32.totalorder %v305_v21, %v101_v37  ;;  %vm105_vm14 = vcmp.eq.s32.totalorder %v308_v23, %v101_v37  ;;  %vm118_vm15 = vcmp.eq.s32.totalorder %v305_v21, %v115_v38  ;;  %vm119_vm0 = vcmp.eq.s32.totalorder %v308_v23, %v115_v38 }
  0x90   :  { %v108_v41 = vsel %vm104_vm13, -10000.0, %v94_v35  ;;  %v109_v42 = vsel %vm105_vm14, -10000.0, %v95_v36  ;;  %vm116_vm13 = vcmp.eq.s32.totalorder %v305_v21, %v303_v17  ;;  %vm117_vm14 = vcmp.eq.s32.totalorder %v308_v23, %v303_v17 }
  0x91   :  { %v122_v43 = vsel %vm118_vm15, -10000.0, %v108_v41  ;;  %v123_v44 = vsel %vm119_vm0, -10000.0, %v109_v42 }
  0x92   :  { %v136_v46 = vsel %vm132_vm10, -10000.0, %v122_v43  ;;  %v137_v47 = vsel %vm133_vm11, -10000.0, %v123_v44  ;;  %vm89_vm10 = vcmp.eq.s32.totalorder %v308_v23, %v318_v27  ;;  %vm102_vm11 = vcmp.eq.s32.totalorder %v305_v21, %v299_v14  ;;  %v178_v27 = vld [vmem:[%s442_s3 + $0x8] sm:$0xff] }
  0x93   :  { %v150_v50 = vsel %vm146_vm12, -10000.0, %v136_v46  ;;  %v151_v51 = vsel %vm147_vm1, -10000.0, %v137_v47  ;;  %vm103_vm12 = vcmp.eq.s32.totalorder %v308_v23, %v299_v14  ;;  %v93_v61 = vsel %vm89_vm10, -10000.0, %v79_v59 }
  0x94   :  { %vm156_vm5 = vcmp.gt.f32.partialorder %v150_v50, -10000.0  ;;  %vm157_vm6 = vcmp.gt.f32.partialorder %v151_v51, -10000.0  ;;  %v106_v62 = vsel %vm102_vm11, -10000.0, %v92_v60  ;;  %v107_v63 = vsel %vm103_vm12, -10000.0, %v93_v61 }
  0x95   :  { %v221_v52 = vsel %vm156_vm5, 1.0, %v259_v45  ;;  %v222_v53 = vsel %vm157_vm6, 1.0, %v259_v45  ;;  %v120_v0 = vsel %vm116_vm13, -10000.0, %v106_v62  ;;  %v121_v1 = vsel %vm117_vm14, -10000.0, %v107_v63 }
  0x96   :  { %v169_v56 = vadd.f32 %v222_v53, %v221_v52 }
  0x97   :  { %v126_v57 = vpop.permute.xlu1 %125  ;;  %v182_v3 = vpop.permute.xlu0 %181 }
  0x98   :  { %170 = vadd.xlane.f32.xlu1 %v169_v56  ;;  %vm130_vm15 = vcmp.eq.s32.totalorder %v305_v21, %v126_v57  ;;  %vm131_vm0 = vcmp.eq.s32.totalorder %v308_v23, %v126_v57 }
  0x99   :  { %v134_v4 = vsel %vm130_vm15, -10000.0, %v120_v0  ;;  %v135_v5 = vsel %vm131_vm0, -10000.0, %v121_v1 }
  0xa0   :  { %v140_v2 = vpop.permute.xlu1 %139 }
  0xa1   :  { %vm144_vm1 = vcmp.eq.s32.totalorder %v305_v21, %v140_v2  ;;  %vm145_vm3 = vcmp.eq.s32.totalorder %v308_v23, %v140_v2  ;;  %v152_v21 = vld [vmem:[%s441_s4] sm:$0xff] }
  0xa2   :  { %v148_v6 = vsel %vm144_vm1, -10000.0, %v134_v4  ;;  %v149_v7 = vsel %vm145_vm3, -10000.0, %v135_v5 }
  0xa3   :  { %vm189_vm4 = vcmp.lt.f32.partialorder %v182_v3, %v148_v6  ;;  %vm190_vm5 = vcmp.lt.f32.partialorder %v182_v3, %v149_v7  ;;  %vm154_vm6 = vcmp.gt.f32.partialorder %v148_v6, -10000.0  ;;  %vm155_vm7 = vcmp.gt.f32.partialorder %v149_v7, -10000.0 }
  0xa4   :  { %v219_v8 = vsel %vm154_vm6, 1.0, %v259_v45  ;;  %v220_v9 = vsel %vm155_vm7, 1.0, %v259_v45  ;;  %v223_v10 = vsel %vm189_vm4, 1.0, %v259_v45  ;;  %v224_v11 = vsel %vm190_vm5, 1.0, %v259_v45 }
  0xa5   :  { %v166_v12 = vadd.f32 %v220_v9, %v219_v8  ;;  %v201_v13 = vadd.f32 %v224_v11, %v223_v10 }
  0xa7   :  { %167 = vadd.xlane.f32.xlu2 %v166_v12  ;;  %202 = vadd.xlane.f32.xlu0 %v201_v13 }
  0xa9   :  { %v187_v14 = vpop.permute.xlu1 %186 }
  0xaa   :  { %vm191_vm8 = vcmp.lt.f32.partialorder %v187_v14, %v150_v50  ;;  %vm192_vm9 = vcmp.lt.f32.partialorder %v187_v14, %v151_v51 }
  0xab   :  { %v225_v15 = vsel %vm191_vm8, 1.0, %v259_v45  ;;  %v226_v16 = vsel %vm192_vm9, 1.0, %v259_v45 }
  0xac   :  { %v204_v17 = vadd.f32 %v226_v16, %v225_v15 }
  0xaf   :  { %205 = vadd.xlane.f32.xlu2 %v204_v17 }
 0x10b   :  { %v171_v19 = vpop.xlane.xlu1 %170 }
 0x10c   :  { %v173_v20 = vadd.f32 %v171_v19, %v153_v18 }
 0x10e   :  { %176 = vst.msk [vmem:[%s441_s4 + $0x8] sm:$0xff] %vm20_vm2, %v173_v20 }
 0x11a   :  { %v168_v23 = vpop.xlane.xlu2 %167  ;;  %v203_v24 = vpop.xlane.xlu0 %202 }
 0x11b   :  { %v172_v25 = vadd.f32 %v168_v23, %v152_v21  ;;  %v207_v26 = vadd.f32 %v203_v24, %v177_v22 }
 0x11d   :  { %175 = vst.msk [vmem:[%s441_s4] sm:$0xff] %vm20_vm2, %v172_v25 }
 0x11e   :  { %209 = vst.msk [vmem:[%s442_s3] sm:$0xff] %vm20_vm2, %v207_v26 }
 0x122   :  { %v206_v28 = vpop.xlane.xlu2 %205 }
 0x123   :  { %v208_v29 = vadd.f32 %v206_v28, %v178_v27 }
 0x125   :  { %210 = vst.msk [vmem:[%s442_s3 + $0x8] sm:$0xff] %vm20_vm2, %v208_v29 }

</bundles_post_ra>
